<compile_context>
chip_gen: v7x
topology: tpu7x:2x2x1
jax: 0.10.0
libtpu: 0.0.40
codegen_flags: <defaults>
</compile_context>

<pallas_src>
import jax
import jax.numpy as jnp
from jax.experimental import pallas as pl
from jax.experimental.pallas import tpu as pltpu


def _additive_attn_kernel(x_ref, w_ref, b_ref, q_ref, o_ref):
    # x_ref: (TB, S, D)  block of candidate vectors
    # w_ref: (D, Q)      linear weight (transposed), VMEM-resident
    # b_ref: (1, Q)      linear bias, VMEM-resident
    # q_ref: (1, Q)      attention query vector, VMEM-resident
    # o_ref: (TB, D)     output block
    tb, s_dim, d = x_ref.shape
    q_dim = w_ref.shape[1]

    w = w_ref[...]                                    # (D, Q)
    b = b_ref[...]                                    # (1, Q)
    qv = q_ref[...]                                   # (1, Q)
    x = x_ref[...]                                    # (TB, S, D)

    # Linear + tanh on a single (TB*S, D) slab -> one MXU pass per tile.
    # For S == 8 (== sublane tile) the reshape is layout-free.
    # TODO(synk): for general S, pre-flatten to (B*S, D) in the wrapper and do
    # the softmax grouping on a lane-dense (TB, S*D) view instead.
    x2d = x.reshape(tb * s_dim, d)                    # (TB*S, D)
    temp = jnp.tanh(
        jnp.dot(x2d, w, preferred_element_type=jnp.float32) + b
    )                                                 # (TB*S, Q)

    # scores[b, s] = <temp[b, s, :], query>
    scores = jnp.sum(temp.reshape(tb, s_dim, q_dim) * qv, axis=-1)  # (TB, S)

    # Numerically stable softmax over the candidate axis.
    m = jnp.max(scores, axis=-1, keepdims=True)       # (TB, 1)
    e = jnp.exp(scores - m)                           # (TB, S)
    denom = jnp.sum(e, axis=-1, keepdims=True)        # (TB, 1)
    # EUP approximate reciprocal (~1e-4 rel err); the kernel is memory /
    # step-overhead bound, so approx=False costs essentially nothing either.
    weights = e * pl.reciprocal(denom, approx=True)   # (TB, S)

    # Fused weighted sum over candidates: short unrolled accumulation keeps
    # intermediates at (TB, D) instead of materializing a (TB, S, D) product
    # plus an XLU sublane-reduce (VMEM saved goes to bigger tiles).
    acc = weights[:, 0:1] * x[:, 0, :]                # (TB, D) f32
    for s in range(1, s_dim):
        acc = acc + weights[:, s:s + 1] * x[:, s, :]
    o_ref[...] = acc.astype(o_ref.dtype)


def additive_attention(candidate_vector, weight_t, bias, query_vector, *,
                       x_tile_budget_bytes=4 * 1024 * 1024,
                       max_block_b=4096):
    """
    candidate_vector: (B, S, D) float32
    weight_t:         (D, Q)    float32  (torch linear.weight.T)
    bias:             (Q,)      float32
    query_vector:     (Q,)      float32
    returns:          (B, D)    float32
    """
    B, S, D = candidate_vector.shape
    Q = weight_t.shape[1]
    itemsize = jnp.dtype(candidate_vector.dtype).itemsize
    bytes_per_row = S * D * itemsize

    # Batch tile from a VMEM byte budget, rounded down to a sublane multiple.
    tb = max(8, min(max_block_b, x_tile_budget_bytes // max(bytes_per_row, 1)))
    tb = (tb // 8) * 8
    if B <= tb:
        tb = B                      # one block covering the whole batch
        n_blocks = 1
    else:
        # Prefer >= 4 grid steps (two v7x TensorCores x >= 2-deep pipeline) as
        # long as the tile stays large enough to amortize per-step overhead.
        while tb > 512 and -(-B // tb) < 4:
            tb = max(512, ((tb // 2) // 8) * 8)
        n_blocks = -(-B // tb)
    b_pad = n_blocks * tb
    if b_pad != B:
        candidate_vector = jnp.pad(
            candidate_vector, ((0, b_pad - B), (0, 0), (0, 0)))

    # Tiny parameter reshapes: fold away under jit / do once at model init.
    bias2d = bias.reshape(1, Q)
    query2d = query_vector.reshape(1, Q)

    # Scoped-VMEM sizing: x tile (double-buffered) + out tile (double-buffered)
    # + in-kernel temporaries (temp (TB*S, Q), softmax vectors, accumulator)
    # + headroom, with a 2x safety margin.  Explicitly raising the limit keeps
    # large tiles from tripping v5e's 16 MiB default scoped limit; the 56 MiB
    # cap stays inside v7x's 64 MiB physical VMEM.
    x_tile = tb * S * D * itemsize
    out_tile = tb * D * itemsize
    temps = tb * S * Q * 4 + tb * (3 * S + 2 * D) * 4
    vmem_needed = 2 * x_tile + 2 * out_tile + temps + (1 << 20)
    vmem_limit = int(min(max(2 * vmem_needed, 24 << 20), 56 << 20))

    out = pl.pallas_call(
        _additive_attn_kernel,
        out_shape=jax.ShapeDtypeStruct((b_pad, D), candidate_vector.dtype),
        grid_spec=pltpu.PrefetchScalarGridSpec(
            num_scalar_prefetch=0,
            grid=(n_blocks,),
            in_specs=[
                pl.BlockSpec((tb, S, D), lambda i: (i, 0, 0)),
                pl.BlockSpec((D, Q), lambda i: (0, 0)),   # VMEM-resident
                pl.BlockSpec((1, Q), lambda i: (0, 0)),   # VMEM-resident
                pl.BlockSpec((1, Q), lambda i: (0, 0)),   # VMEM-resident
            ],
            out_specs=pl.BlockSpec((tb, D), lambda i: (i, 0)),
        ),
        compiler_params=pltpu.CompilerParams(
            # Shards grid steps across both TensorCores on v7x; measured
            # neutral on single-TC v5e/v6e.
            dimension_semantics=("parallel",),
            vmem_limit_bytes=vmem_limit,
        ),
    )(candidate_vector, weight_t, bias2d, query2d)

    return out[:B]


def additive_attention_ref(candidate_vector, weight_t, bias, query_vector):
    temp = jnp.tanh(jnp.einsum("bsd,dq->bsq", candidate_vector, weight_t) + bias)
    scores = jnp.einsum("bsq,q->bs", temp, query_vector)
    w = jax.nn.softmax(scores, axis=1)
    return jnp.einsum("bs,bsd->bd", w, candidate_vector)


if __name__ == "__main__":
    # Small deterministic setup consistent with the module's forward:
    # batch=2, candidate_size=8, candidate_vector_dim=32, query_vector_dim=16
    B, S, D, Q = 2, 8, 32, 16

    key = jax.random.PRNGKey(0)
    k_x, k_w, k_b, k_q = jax.random.split(key, 4)

    candidate_vector = jax.random.normal(k_x, (B, S, D), dtype=jnp.float32)
    # nn.Linear(D, Q): weight (Q, D), bias (Q,).  Store transposed weight (D, Q).
    weight_t = (jax.random.uniform(k_w, (D, Q), dtype=jnp.float32) - 0.5) * 0.2
    bias = (jax.random.uniform(k_b, (Q,), dtype=jnp.float32) - 0.5) * 0.2
    # attention_query_vector ~ U(-0.1, 0.1)
    query_vector = (jax.random.uniform(k_q, (Q,), dtype=jnp.float32) - 0.5) * 0.2

    out = additive_attention(candidate_vector, weight_t, bias, query_vector)
    out = jax.block_until_ready(out)

    ref = additive_attention_ref(candidate_vector, weight_t, bias, query_vector)
    assert out.shape == (B, D)
    # Tolerance loosened slightly for the EUP approximate reciprocal in softmax.
    assert jnp.allclose(out, ref, atol=2e-3, rtol=2e-3), float(
        jnp.max(jnp.abs(out - ref)))

    print("KERNEL_OK")
</pallas_src>

<mosaic_0001>
module attributes {stable_mosaic.version = 11 : i64} {
  func.func @_additive_attn_kernel(%arg0: i32, %arg1: memref<2x8x32xf32, #tpu.memory_space<vmem>>, %arg2: memref<32x16xf32, #tpu.memory_space<vmem>>, %arg3: memref<1x16xf32, #tpu.memory_space<vmem>>, %arg4: memref<1x16xf32, #tpu.memory_space<vmem>>, %arg5: memref<2x32xf32, #tpu.memory_space<vmem>>) attributes {dimension_semantics = [#tpu.dimension_semantics<parallel>], iteration_bounds = array<i64: 1>, scalar_prefetch = 0 : i64, scratch_operands = 0 : i64, tpu.core_type = #tpu.core_type<tc>, window_params = [{transform_indices = @transform_0, window_bounds = array<i64: 2, 8, 32>}, {pipeline_mode = #tpu.pipeline_mode<synchronous>, transform_indices = @transform_1, window_bounds = array<i64: 32, 16>}, {pipeline_mode = #tpu.pipeline_mode<synchronous>, transform_indices = @transform_2, window_bounds = array<i64: 1, 16>}, {pipeline_mode = #tpu.pipeline_mode<synchronous>, transform_indices = @transform_3, window_bounds = array<i64: 1, 16>}, {transform_indices = @transform_4, window_bounds = array<i64: 2, 32>}]} {
    %c0 = arith.constant 0 : index
    %c0_0 = arith.constant 0 : index
    %0 = vector.load %arg2[%c0, %c0_0] : memref<32x16xf32, #tpu.memory_space<vmem>>, vector<32x16xf32>
    %c0_1 = arith.constant 0 : index
    %c0_2 = arith.constant 0 : index
    %1 = vector.load %arg3[%c0_1, %c0_2] : memref<1x16xf32, #tpu.memory_space<vmem>>, vector<1x16xf32>
    %c0_3 = arith.constant 0 : index
    %c0_4 = arith.constant 0 : index
    %2 = vector.load %arg4[%c0_3, %c0_4] : memref<1x16xf32, #tpu.memory_space<vmem>>, vector<1x16xf32>
    %c0_5 = arith.constant 0 : index
    %c0_6 = arith.constant 0 : index
    %c0_7 = arith.constant 0 : index
    %3 = vector.load %arg1[%c0_5, %c0_6, %c0_7] : memref<2x8x32xf32, #tpu.memory_space<vmem>>, vector<2x8x32xf32>
    %4 = vector.shape_cast %3 : vector<2x8x32xf32> to vector<16x32xf32>
    %cst = arith.constant dense<0.000000e+00> : vector<16x16xf32>
    %5 = tpu.matmul %4, %0, %cst {dimension_numbers = #tpu.dot_dimension_numbers<[1], [0], [0], [1], [0, 0, 1, 1], [], []>} : vector<16x32xf32>, vector<32x16xf32>, vector<16x16xf32> -> vector<16x16xf32>
    %6 = vector.broadcast %1 : vector<1x16xf32> to vector<16x16xf32>
    %7 = arith.addf %5, %6 : vector<16x16xf32>
    %8 = math.tanh %7 : vector<16x16xf32>
    %9 = vector.shape_cast %8 : vector<16x16xf32> to vector<2x8x16xf32>
    %10 = vector.shape_cast %2 : vector<1x16xf32> to vector<1x1x16xf32>
    %11 = vector.broadcast %10 : vector<1x1x16xf32> to vector<2x8x16xf32>
    %12 = arith.mulf %9, %11 : vector<2x8x16xf32>
    %cst_8 = arith.constant dense<0.000000e+00> : vector<2x8xf32>
    %13 = vector.multi_reduction <add>, %12, %cst_8 [2] : vector<2x8x16xf32> to vector<2x8xf32>
    %cst_9 = arith.constant dense<0xFF800000> : vector<2xf32>
    %14 = vector.multi_reduction <maximumf>, %13, %cst_9 [1] : vector<2x8xf32> to vector<2xf32>
    %15 = vector.shape_cast %14 : vector<2xf32> to vector<2x1xf32>
    %16 = vector.broadcast %15 : vector<2x1xf32> to vector<2x8xf32>
    %17 = arith.subf %13, %16 : vector<2x8xf32>
    %18 = math.exp %17 : vector<2x8xf32>
    %cst_10 = arith.constant dense<0.000000e+00> : vector<2xf32>
    %19 = vector.multi_reduction <add>, %18, %cst_10 [1] : vector<2x8xf32> to vector<2xf32>
    %20 = vector.shape_cast %19 : vector<2xf32> to vector<2x1xf32>
    %21 = tpu.reciprocal %20 {approx = true} : vector<2x1xf32> -> vector<2x1xf32>
    %22 = vector.broadcast %21 : vector<2x1xf32> to vector<2x8xf32>
    %23 = arith.mulf %18, %22 : vector<2x8xf32>
    %24 = vector.extract_strided_slice %23 {offsets = [0, 0], sizes = [2, 1], strides = [1, 1]} : vector<2x8xf32> to vector<2x1xf32>
    %25 = vector.extract_strided_slice %3 {offsets = [0, 0, 0], sizes = [2, 1, 32], strides = [1, 1, 1]} : vector<2x8x32xf32> to vector<2x1x32xf32>
    %26 = vector.shape_cast %25 : vector<2x1x32xf32> to vector<2x32xf32>
    %27 = vector.broadcast %24 : vector<2x1xf32> to vector<2x32xf32>
    %28 = arith.mulf %27, %26 : vector<2x32xf32>
    %29 = vector.extract_strided_slice %23 {offsets = [0, 1], sizes = [2, 1], strides = [1, 1]} : vector<2x8xf32> to vector<2x1xf32>
    %30 = vector.extract_strided_slice %3 {offsets = [0, 1, 0], sizes = [2, 1, 32], strides = [1, 1, 1]} : vector<2x8x32xf32> to vector<2x1x32xf32>
    %31 = vector.shape_cast %30 : vector<2x1x32xf32> to vector<2x32xf32>
    %32 = vector.broadcast %29 : vector<2x1xf32> to vector<2x32xf32>
    %33 = arith.mulf %32, %31 : vector<2x32xf32>
    %34 = arith.addf %28, %33 : vector<2x32xf32>
    %35 = vector.extract_strided_slice %23 {offsets = [0, 2], sizes = [2, 1], strides = [1, 1]} : vector<2x8xf32> to vector<2x1xf32>
    %36 = vector.extract_strided_slice %3 {offsets = [0, 2, 0], sizes = [2, 1, 32], strides = [1, 1, 1]} : vector<2x8x32xf32> to vector<2x1x32xf32>
    %37 = vector.shape_cast %36 : vector<2x1x32xf32> to vector<2x32xf32>
    %38 = vector.broadcast %35 : vector<2x1xf32> to vector<2x32xf32>
    %39 = arith.mulf %38, %37 : vector<2x32xf32>
    %40 = arith.addf %34, %39 : vector<2x32xf32>
    %41 = vector.extract_strided_slice %23 {offsets = [0, 3], sizes = [2, 1], strides = [1, 1]} : vector<2x8xf32> to vector<2x1xf32>
    %42 = vector.extract_strided_slice %3 {offsets = [0, 3, 0], sizes = [2, 1, 32], strides = [1, 1, 1]} : vector<2x8x32xf32> to vector<2x1x32xf32>
    %43 = vector.shape_cast %42 : vector<2x1x32xf32> to vector<2x32xf32>
    %44 = vector.broadcast %41 : vector<2x1xf32> to vector<2x32xf32>
    %45 = arith.mulf %44, %43 : vector<2x32xf32>
    %46 = arith.addf %40, %45 : vector<2x32xf32>
    %47 = vector.extract_strided_slice %23 {offsets = [0, 4], sizes = [2, 1], strides = [1, 1]} : vector<2x8xf32> to vector<2x1xf32>
    %48 = vector.extract_strided_slice %3 {offsets = [0, 4, 0], sizes = [2, 1, 32], strides = [1, 1, 1]} : vector<2x8x32xf32> to vector<2x1x32xf32>
    %49 = vector.shape_cast %48 : vector<2x1x32xf32> to vector<2x32xf32>
    %50 = vector.broadcast %47 : vector<2x1xf32> to vector<2x32xf32>
    %51 = arith.mulf %50, %49 : vector<2x32xf32>
    %52 = arith.addf %46, %51 : vector<2x32xf32>
    %53 = vector.extract_strided_slice %23 {offsets = [0, 5], sizes = [2, 1], strides = [1, 1]} : vector<2x8xf32> to vector<2x1xf32>
    %54 = vector.extract_strided_slice %3 {offsets = [0, 5, 0], sizes = [2, 1, 32], strides = [1, 1, 1]} : vector<2x8x32xf32> to vector<2x1x32xf32>
    %55 = vector.shape_cast %54 : vector<2x1x32xf32> to vector<2x32xf32>
    %56 = vector.broadcast %53 : vector<2x1xf32> to vector<2x32xf32>
    %57 = arith.mulf %56, %55 : vector<2x32xf32>
    %58 = arith.addf %52, %57 : vector<2x32xf32>
    %59 = vector.extract_strided_slice %23 {offsets = [0, 6], sizes = [2, 1], strides = [1, 1]} : vector<2x8xf32> to vector<2x1xf32>
    %60 = vector.extract_strided_slice %3 {offsets = [0, 6, 0], sizes = [2, 1, 32], strides = [1, 1, 1]} : vector<2x8x32xf32> to vector<2x1x32xf32>
    %61 = vector.shape_cast %60 : vector<2x1x32xf32> to vector<2x32xf32>
    %62 = vector.broadcast %59 : vector<2x1xf32> to vector<2x32xf32>
    %63 = arith.mulf %62, %61 : vector<2x32xf32>
    %64 = arith.addf %58, %63 : vector<2x32xf32>
    %65 = vector.extract_strided_slice %23 {offsets = [0, 7], sizes = [2, 1], strides = [1, 1]} : vector<2x8xf32> to vector<2x1xf32>
    %66 = vector.extract_strided_slice %3 {offsets = [0, 7, 0], sizes = [2, 1, 32], strides = [1, 1, 1]} : vector<2x8x32xf32> to vector<2x1x32xf32>
    %67 = vector.shape_cast %66 : vector<2x1x32xf32> to vector<2x32xf32>
    %68 = vector.broadcast %65 : vector<2x1xf32> to vector<2x32xf32>
    %69 = arith.mulf %68, %67 : vector<2x32xf32>
    %70 = arith.addf %64, %69 : vector<2x32xf32>
    %c0_11 = arith.constant 0 : index
    %c0_12 = arith.constant 0 : index
    %71 = vector.load %arg5[%c0_11, %c0_12] : memref<2x32xf32, #tpu.memory_space<vmem>>, vector<2x32xf32>
    tpu.vector_store %arg5[%c0_11, %c0_12], %70 {strides = array<i32>} : memref<2x32xf32, #tpu.memory_space<vmem>>, vector<2x32xf32>,
    return
  }
  func.func @transform_0(%arg0: i32) -> (i32, i32, i32) {
    %c0_i32 = arith.constant 0 : i32
    %c0_i32_0 = arith.constant 0 : i32
    %c0_i32_1 = arith.constant 0 : i32
    return %arg0, %c0_i32, %c0_i32_0 : i32, i32, i32
  }
  func.func @transform_1(%arg0: i32) -> (i32, i32) {
    %c0_i32 = arith.constant 0 : i32
    %c0_i32_0 = arith.constant 0 : i32
    %c0_i32_1 = arith.constant 0 : i32
    return %c0_i32, %c0_i32_0 : i32, i32
  }
  func.func @transform_2(%arg0: i32) -> (i32, i32) {
    %c0_i32 = arith.constant 0 : i32
    %c0_i32_0 = arith.constant 0 : i32
    %c0_i32_1 = arith.constant 0 : i32
    return %c0_i32, %c0_i32_0 : i32, i32
  }
  func.func @transform_3(%arg0: i32) -> (i32, i32) {
    %c0_i32 = arith.constant 0 : i32
    %c0_i32_0 = arith.constant 0 : i32
    %c0_i32_1 = arith.constant 0 : i32
    return %c0_i32, %c0_i32_0 : i32, i32
  }
  func.func @transform_4(%arg0: i32) -> (i32, i32) {
    %c0_i32 = arith.constant 0 : i32
    %c0_i32_0 = arith.constant 0 : i32
    return %arg0, %c0_i32 : i32, i32
  }
}

</mosaic_0001>

<bundles_post_ra>
// kernel: tpu_custom_call.1
= control target key start
LH: loop header
LB: loop body
LE: loop exit
PB: predicated region body
PF: predicated region fallthrough
CT: control target
= control target key end

     0   :  { %vm32_vm0 = vcmask 261120   ;;  %s1327_s0 = inlined_call_operand.vmem [shape: f32[2,8,32], index: 0, kind: input, shape index: {}]   ;;  %s1328_s1 = inlined_call_operand.vmem [shape: f32[32,16], index: 1, kind: input, shape index: {}]   ;;  %s1329_s2 = inlined_call_operand.vmem [shape: f32[1,16], index: 2, kind: input, shape index: {}]   ;;  %s1330_s3 = inlined_call_operand.vmem [shape: f32[1,16], index: 3, kind: input, shape index: {}]   ;;  %s1331_s4 = inlined_call_operand.hbm [shape: f32[2,32], index: 4, kind: output, shape index: {}]  }
   0x1   :  { %v18_v0 = vld [vmem:[%s1328_s1] sm:$0xff]  ;;  %v19_v1 = vld [vmem:[%s1328_s1 + $0x8] sm:$0xff]  ;;  %v20_v2 = vld [vmem:[%s1328_s1 + $0x10] sm:$0xff] }
   0x2   :  { %v869_v3 = vpack.c.bf16 %v19_v1, %v18_v0  ;;  %v21_v4 = vld [vmem:[%s1328_s1 + $0x18] sm:$0xff]  ;;  %v957_v5 = vld [vmem:[%s1327_s0] sm:$0xff] }
   0x3   :  { %v873_v6 = vpack.c.bf16 %v21_v4, %v20_v2  ;;  %866 = vmatprep.mubr.msk.f32.mxu0 %vm32_vm0, %v957_v5 }
   0x4   :  { %9 = vsyncpa [#allocation3], 0  ;;  %870 = vmatprep.subr.bf16.mxu0 %v869_v3  ;;  %v963_v7 = vld [vmem:[%s1327_s0 + $0x8] sm:$0xff]  ;;  %v848_v8 = vld [vmem:[%s1329_s2] ss:$0 sm:$0xff]  ;;  %vm124_vm1 = vcmask 130048   ;;  %v133_v20 = vlaneseq }
   0x5   :  { %872 = vmatpush3.bf16.msra.mxu0 %v869_v3  ;;  %v851_v13 = vld [vmem:[%s1330_s3] ss:$0 sm:$0xff]  ;;  %vm143_vm2 = vcmask 1041409   ;;  %vm146_vm3 = vcmask 58368   ;;  %v915_v33 = vmov 0   ;;  %vm795_vm4 = vcmask 130112  }
   0x6   :  { %874 = vmatprep.subr.bf16.mxu0 %v873_v6  ;;  %v972_v21 = vshrl.u32 %v133_v20, 7  ;;  %v979_v24 = vand.u32 127, %v133_v20  ;;  %880 = vset.pattern.permute.xlu0 %v915_v33  ;;  %vm802_vm5 = vcmask 195712   ;;  %vm809_vm6 = vcmask 261312   ;;  %s916_s0 = smov [#allocation2]  }
   0x7   :  { %879 = vset.pattern.permute.xlu1 %v915_v33  ;;  %s840_s2 = sshll.u32 %s916_s0, 4  ;;  %vm832_vm7 = vcmask 254976   ;;  %s841_s2 = int_to_ptr.vmem [resolvable:$true] %s840_s2 }
   0x8   :  { %1338 = vst [vmem:[#allocation5_spill] sm:$0xff] %v972_v21  ;;  %v975_v22 = vsub.s32 0, %v972_v21  ;;  %1339 = vst [vmem:[#allocation6_spill] sm:$0xff] %v979_v24  ;;  %v983_v26 = vsub.s32 %v979_v24, %v972_v21  ;;  %v992_v34 = vsub.s32 1, %v972_v21  ;;  %v1007_v46 = vsub.s32 2, %v972_v21  ;;  %s891_s3 = scalar_lea.vmem %s841_s2, 32  ;;  %p896_p1 = scmp.lt.s32.totalorder %s841_s2, %s841_s2 }
   0x9   :  { %876 = vmatpush3.bf16.msra.mxu0 %v873_v6  ;;  %v1014_v49 = vsub.s32 3, %v972_v21  ;;  %v1021_v52 = vsub.s32 4, %v972_v21  ;;  %v1028_v55 = vsub.s32 5, %v972_v21  ;;  %v1035_v58 = vsub.s32 6, %v972_v21  ;;  %p892_p0 = scmp.ne.s32.totalorder %s841_s2, %s891_s3  ;;  %p897_p2 = scmp.lt.s32.totalorder %s891_s3, %s891_s3 }
   0xa   :  { %v213_v23 = vrot.slane %v957_v5, %v975_v22  ;;  %1340 = vst [vmem:[#allocation7_spill] sm:$0xff] %v983_v26  ;;  %v232_v32 = vrot.slane %v963_v7, %v975_v22  ;;  %v275_v44 = vrot.slane %v957_v5, %v992_v34  ;;  %v294_v45 = vrot.slane %v963_v7, %v992_v34 }
   0xb   :  { %v345_v47 = vrot.slane %v957_v5, %v1007_v46  ;;  %v364_v48 = vrot.slane %v963_v7, %v1007_v46  ;;  %v415_v50 = vrot.slane %v957_v5, %v1014_v49  ;;  %v434_v51 = vrot.slane %v963_v7, %v1014_v49  ;;  %p898_p3 = por %p897_p2, %p896_p1 }
   0xc   :  { %867 = vmatmul.mubr.msk.f32.vlgmr.msra.gmra.mrb[0].mxu0 %vm32_vm0, %v963_v7  ;;  %v485_v53 = vrot.slane %v957_v5, %v1021_v52  ;;  %v504_v54 = vrot.slane %v963_v7, %v1021_v52  ;;  %v555_v56 = vrot.slane %v957_v5, %v1028_v55  ;;  %v574_v57 = vrot.slane %v963_v7, %v1028_v55 }
   0xd   :  { %v625_v59 = vrot.slane %v957_v5, %v1035_v58  ;;  %v644_v60 = vrot.slane %v963_v7, %v1035_v58  ;;  %v1042_v61 = vsub.s32 7, %v972_v21  ;;  %p899_p4 = pnand %p898_p3, %p892_p0 }
   0xf   :  { %v695_v63 = vrot.slane %v957_v5, %v1042_v61  ;;  %v714_v0 = vrot.slane %v963_v7, %v1042_v61 }
  0xdf   :  { %v868_v9 = vpop.f32.mrb[0].mxu0 }
  0xe0   :  { %v111_v10 = vadd.f32 %v868_v9, %v848_v8  ;;  %v105_v11 = vpop.f32.mrb[1].mxu0 }
  0xe1   :  { %v106_v12 = vadd.f32 %v848_v8, %v105_v11 }
  0xe2   :  { %881 = vtanh.f32 %v111_v10 }
  0xe3   :  { %883 = vtanh.f32 %v106_v12 }
  0xec   :  { %v882_v14 = vpop.eup %881 }
  0xed   :  { %v884_v15 = vpop.eup %883  ;;  %v123_v18 = vmul.f32 %v882_v14, %v851_v13 }
  0xee   :  { %v122_v16 = vmul.f32 %v884_v15, %v851_v13 }
  0xef   :  { %v128_v19 = vsel %vm124_vm1, %v123_v18, 0.0 }
  0xf0   :  { %v125_v17 = vsel %vm124_vm1, %v122_v16, 0.0 }
  0xf1   :  { %126 = vadd.xlane.f32.xlu0 %v125_v17 }
  0xf5   :  { %129 = vadd.xlane.f32.xlu0 %v128_v19 }
 0x10b   :  { %215 = vbcast.lane.b32.xlu0 %v213_v23, 256 }
 0x10f   :  { %219 = vbcast.lane.b32.xlu0 %v213_v23, 264 }
 0x113   :  { %227 = vbcast.lane.b32.xlu0 %v213_v23, 280 }
 0x117   :  { %234 = vbcast.lane.b32.xlu0 %v232_v32, 256 }
 0x11b   :  { %238 = vbcast.lane.b32.xlu0 %v232_v32, 264 }
 0x17e   :  { %v127_v25 = vpop.xlane.xlu0 %126 }
 0x17f   :  { %v138_v28 = vrot.slane %v127_v25, %v983_v26 }
 0x182   :  { %v130_v27 = vpop.xlane.xlu0 %129 }
 0x183   :  { %v142_v29 = vrot.slane %v130_v27, %v983_v26 }
 0x185   :  { %v144_v30 = vsel %vm143_vm2, %v142_v29, %v138_v28 }
 0x186   :  { %v147_v31 = vsel %vm146_vm3, %v144_v30, -inf  ;;  %v1044_v62 = vpop.permute.xlu0 %215 }
 0x187   :  { %148 = vmax.xlane.f32.xlu1 %v147_v31 }
 0x18a   :  { %v1050_v1 = vpop.permute.xlu0 %219 }
 0x18e   :  { %v1052_v2 = vpop.permute.xlu0 %227 }
 0x192   :  { %v1054_v3 = vpop.permute.xlu0 %234 }
 0x196   :  { %v1058_v6 = vpop.permute.xlu0 %238 }
 0x198   :  { %223 = vbcast.lane.b32.xlu1 %v213_v23, 272 }
 0x214   :  { %v149_v35 = vpop.xlane.xlu1 %148 }
 0x215   :  { %v154_v36 = vrot.slane %v149_v35, %v975_v22  ;;  %v158_v37 = vrot.slane %v149_v35, %v992_v34 }
 0x217   :  { %v161_v38 = vsub.f32 %v127_v25, %v154_v36  ;;  %v162_v39 = vsub.f32 %v130_v27, %v158_v37 }
 0x218   :  { %v1056_v4 = vpop.permute.xlu1 %223 }
 0x219   :  { %v163_v40 = vmul.f32 1.442695, %v161_v38  ;;  %v165_v41 = vmul.f32 1.442695, %v162_v39 }
 0x21b   :  { %885 = vpow2.f32 %v163_v40 }
 0x21c   :  { %887 = vpow2.f32 %v165_v41 }
 0x225   :  { %v996_v42 = vpop.eup %885 }
 0x226   :  { %v998_v43 = vpop.eup %887  ;;  %170 = vperm.xlu1 %879, %v996_v42  }
 0x227   :  { %173 = vperm.xlu0 %880, %v998_v43  }
 0x22a   :  { %277 = vbcast.lane.b32.xlu1 %v275_v44, 256 }
 0x22b   :  { %242 = vbcast.lane.b32.xlu0 %v232_v32, 272 }
 0x22e   :  { %296 = vbcast.lane.b32.xlu1 %v294_v45, 256 }
 0x22f   :  { %281 = vbcast.lane.b32.xlu0 %v275_v44, 264 }
 0x232   :  { %285 = vbcast.lane.b32.xlu1 %v275_v44, 272 }
 0x233   :  { %300 = vbcast.lane.b32.xlu0 %v294_v45, 264 }
 0x236   :  { %246 = vbcast.lane.b32.xlu1 %v232_v32, 280 }
 0x237   :  { %304 = vbcast.lane.b32.xlu0 %v294_v45, 272 }
 0x23a   :  { %308 = vbcast.lane.b32.xlu1 %v294_v45, 280 }
 0x23b   :  { %289 = vbcast.lane.b32.xlu0 %v275_v44, 280 }
 0x23e   :  { %351 = vbcast.lane.b32.xlu1 %v345_v47, 264 }
 0x23f   :  { %347 = vbcast.lane.b32.xlu0 %v345_v47, 256 }
 0x242   :  { %370 = vbcast.lane.b32.xlu1 %v364_v48, 264 }
 0x243   :  { %366 = vbcast.lane.b32.xlu0 %v364_v48, 256 }
 0x246   :  { %374 = vbcast.lane.b32.xlu1 %v364_v48, 272 }
 0x247   :  { %355 = vbcast.lane.b32.xlu0 %v345_v47, 272 }
 0x24a   :  { %378 = vbcast.lane.b32.xlu1 %v364_v48, 280 }
 0x24b   :  { %359 = vbcast.lane.b32.xlu0 %v345_v47, 280 }
 0x24e   :  { %421 = vbcast.lane.b32.xlu1 %v415_v50, 264 }
 0x24f   :  { %417 = vbcast.lane.b32.xlu0 %v415_v50, 256 }
 0x252   :  { %440 = vbcast.lane.b32.xlu1 %v434_v51, 264 }
 0x253   :  { %436 = vbcast.lane.b32.xlu0 %v434_v51, 256 }
 0x256   :  { %444 = vbcast.lane.b32.xlu1 %v434_v51, 272 }
 0x257   :  { %425 = vbcast.lane.b32.xlu0 %v415_v50, 272 }
 0x25a   :  { %448 = vbcast.lane.b32.xlu1 %v434_v51, 280 }
 0x25b   :  { %429 = vbcast.lane.b32.xlu0 %v415_v50, 280 }
 0x25e   :  { %491 = vbcast.lane.b32.xlu1 %v485_v53, 264 }
 0x25f   :  { %487 = vbcast.lane.b32.xlu0 %v485_v53, 256 }
 0x262   :  { %510 = vbcast.lane.b32.xlu1 %v504_v54, 264 }
 0x263   :  { %506 = vbcast.lane.b32.xlu0 %v504_v54, 256 }
 0x266   :  { %514 = vbcast.lane.b32.xlu1 %v504_v54, 272 }
 0x267   :  { %495 = vbcast.lane.b32.xlu0 %v485_v53, 272 }
 0x26a   :  { %518 = vbcast.lane.b32.xlu1 %v504_v54, 280 }
 0x26b   :  { %499 = vbcast.lane.b32.xlu0 %v485_v53, 280 }
 0x26e   :  { %561 = vbcast.lane.b32.xlu1 %v555_v56, 264 }
 0x26f   :  { %557 = vbcast.lane.b32.xlu0 %v555_v56, 256 }
 0x272   :  { %580 = vbcast.lane.b32.xlu1 %v574_v57, 264 }
 0x273   :  { %576 = vbcast.lane.b32.xlu0 %v574_v57, 256 }
 0x276   :  { %584 = vbcast.lane.b32.xlu1 %v574_v57, 272 }
 0x277   :  { %565 = vbcast.lane.b32.xlu0 %v555_v56, 272 }
 0x27a   :  { %588 = vbcast.lane.b32.xlu1 %v574_v57, 280 }
 0x27b   :  { %569 = vbcast.lane.b32.xlu0 %v555_v56, 280 }
 0x27e   :  { %631 = vbcast.lane.b32.xlu1 %v625_v59, 264 }
 0x27f   :  { %627 = vbcast.lane.b32.xlu0 %v625_v59, 256 }
 0x282   :  { %650 = vbcast.lane.b32.xlu1 %v644_v60, 264 }
 0x283   :  { %646 = vbcast.lane.b32.xlu0 %v644_v60, 256 }
 0x286   :  { %654 = vbcast.lane.b32.xlu1 %v644_v60, 272 }
 0x287   :  { %635 = vbcast.lane.b32.xlu0 %v625_v59, 272 }
 0x28a   :  { %658 = vbcast.lane.b32.xlu1 %v644_v60, 280 }
 0x28b   :  { %639 = vbcast.lane.b32.xlu0 %v625_v59, 280 }
 0x28f   :  { %697 = vbcast.lane.b32.xlu0 %v695_v63, 256 }
 0x293   :  { %716 = vbcast.lane.b32.xlu0 %v714_v0, 256 }
 0x297   :  { %705 = vbcast.lane.b32.xlu0 %v695_v63, 272 }
 0x29b   :  { %709 = vbcast.lane.b32.xlu0 %v695_v63, 280 }
 0x2a5   :  { %v171_v8 = vpop.permute.xlu1 %170 }
 0x2a6   :  { %v178_v5 = vrot.slane %v171_v8, %v983_v26  ;;  %v174_v9 = vpop.permute.xlu0 %173 }
 0x2a7   :  { %v182_v10 = vrot.slane %v174_v9, %v983_v26 }
 0x2a9   :  { %v1062_v7 = vpop.permute.xlu1 %277  ;;  %v183_v11 = vsel %vm143_vm2, %v182_v10, %v178_v5 }
 0x2aa   :  { %v185_v13 = vsel %vm146_vm3, %v183_v11, 0.0  ;;  %v1074_v17 = vpop.permute.xlu0 %242 }
 0x2ad   :  { %v1065_v12 = vpop.permute.xlu1 %296 }
 0x2ae   :  { %186 = vadd.xlane.f32.xlu1 %v185_v13  ;;  %v282_v19 = vpop.permute.xlu0 %281 }
 0x2b1   :  { %v1068_v14 = vpop.permute.xlu1 %285 }
 0x2b2   :  { %v1080_v23 = vpop.permute.xlu0 %300 }
 0x2b5   :  { %v1070_v15 = vpop.permute.xlu1 %246 }
 0x2b6   :  { %1341 = vst [vmem:[#allocation8_spill] sm:$0xff] %v1070_v15  ;;  %v1084_v27 = vpop.permute.xlu0 %304 }
 0x2b9   :  { %v1072_v16 = vpop.permute.xlu1 %308 }
 0x2ba   :  { %1342 = vst [vmem:[#allocation9_spill] sm:$0xff] %v1072_v16  ;;  %v290_v29 = vpop.permute.xlu0 %289 }
 0x2bd   :  { %v1076_v18 = vpop.permute.xlu1 %351 }
 0x2be   :  { %v1090_v31 = vpop.permute.xlu0 %347 }
 0x2bf   :  { %701 = vbcast.lane.b32.xlu1 %v695_v63, 264 }
 0x2c1   :  { %v1078_v20 = vpop.permute.xlu1 %370 }
 0x2c2   :  { %v1094_v33 = vpop.permute.xlu0 %366 }
 0x2c3   :  { %720 = vbcast.lane.b32.xlu1 %v714_v0, 264 }
 0x2c5   :  { %v1082_v25 = vpop.permute.xlu1 %374 }
 0x2c6   :  { %1343 = vst [vmem:[#allocation10_spill] sm:$0xff] %v1082_v25  ;;  %v1098_v36 = vpop.permute.xlu0 %355 }
 0x2c7   :  { %724 = vbcast.lane.b32.xlu1 %v714_v0, 272  ;;  %1346 = vst [vmem:[#allocation13_spill] sm:$0xff] %v1098_v36 }
 0x2c9   :  { %v1086_v28 = vpop.permute.xlu1 %378 }
 0x2ca   :  { %1344 = vst [vmem:[#allocation11_spill] sm:$0xff] %v1086_v28  ;;  %v360_v38 = vpop.permute.xlu0 %359 }
 0x2cb   :  { %728 = vbcast.lane.b32.xlu1 %v714_v0, 280 }
 0x2cd   :  { %v1088_v30 = vpop.permute.xlu1 %421 }
 0x2ce   :  { %v1102_v40 = vpop.permute.xlu0 %417 }
 0x2d1   :  { %v1092_v32 = vpop.permute.xlu1 %440 }
 0x2d2   :  { %v1106_v44 = vpop.permute.xlu0 %436 }
 0x2d5   :  { %v1096_v35 = vpop.permute.xlu1 %444 }
 0x2d6   :  { %1345 = vst [vmem:[#allocation12_spill] sm:$0xff] %v1096_v35  ;;  %v1110_v47 = vpop.permute.xlu0 %425 }
 0x2d7   :  { %1349 = vst [vmem:[#allocation16_spill] sm:$0xff] %v1110_v47 }
 0x2d9   :  { %v1100_v37 = vpop.permute.xlu1 %448 }
 0x2da   :  { %1347 = vst [vmem:[#allocation14_spill] sm:$0xff] %v1100_v37  ;;  %v430_v50 = vpop.permute.xlu0 %429 }
 0x2dd   :  { %v492_v39 = vpop.permute.xlu1 %491 }
 0x2de   :  { %v488_v53 = vpop.permute.xlu0 %487 }
 0x2e1   :  { %v1104_v41 = vpop.permute.xlu1 %510 }
 0x2e2   :  { %v1116_v56 = vpop.permute.xlu0 %506 }
 0x2e5   :  { %v1108_v45 = vpop.permute.xlu1 %514 }
 0x2e6   :  { %1348 = vst [vmem:[#allocation15_spill] sm:$0xff] %v1108_v45  ;;  %v1120_v59 = vpop.permute.xlu0 %495 }
 0x2e7   :  { %1352 = vst [vmem:[#allocation19_spill] sm:$0xff] %v1120_v59 }
 0x2e9   :  { %v1112_v48 = vpop.permute.xlu1 %518 }
 0x2ea   :  { %1350 = vst [vmem:[#allocation17_spill] sm:$0xff] %v1112_v48  ;;  %v500_v63 = vpop.permute.xlu0 %499 }
 0x2ed   :  { %v562_v51 = vpop.permute.xlu1 %561 }
 0x2ee   :  { %v558_v8 = vpop.permute.xlu0 %557 }
 0x2f1   :  { %v1114_v54 = vpop.permute.xlu1 %580 }
 0x2f2   :  { %v1126_v9 = vpop.permute.xlu0 %576 }
 0x2f5   :  { %v1118_v57 = vpop.permute.xlu1 %584 }
 0x2f6   :  { %1351 = vst [vmem:[#allocation18_spill] sm:$0xff] %v1118_v57  ;;  %v1130_v11 = vpop.permute.xlu0 %565 }
 0x2f7   :  { %1355 = vst [vmem:[#allocation22_spill] sm:$0xff] %v1130_v11 }
 0x2f9   :  { %v1122_v60 = vpop.permute.xlu1 %588 }
 0x2fa   :  { %1353 = vst [vmem:[#allocation20_spill] sm:$0xff] %v1122_v60  ;;  %v1134_v26 = vpop.permute.xlu0 %569 }
 0x2fb   :  { %1357 = vst [vmem:[#allocation24_spill] sm:$0xff] %v1134_v26 }
 0x2fd   :  { %v632_v0 = vpop.permute.xlu1 %631 }
 0x2fe   :  { %v628_v24 = vpop.permute.xlu0 %627 }
 0x301   :  { %v1124_v5 = vpop.permute.xlu1 %650 }
 0x302   :  { %v1136_v48 = vpop.permute.xlu0 %646 }
 0x305   :  { %v1128_v10 = vpop.permute.xlu1 %654 }
 0x306   :  { %1354 = vst [vmem:[#allocation21_spill] sm:$0xff] %v1128_v10  ;;  %v1140_v28 = vpop.permute.xlu0 %635 }
 0x307   :  { %1358 = vst [vmem:[#allocation25_spill] sm:$0xff] %v1140_v28 }
 0x309   :  { %v1132_v13 = vpop.permute.xlu1 %658 }
 0x30a   :  { %1356 = vst [vmem:[#allocation23_spill] sm:$0xff] %v1132_v13  ;;  %v1172_v47 = vpop.permute.xlu0 %639 }
 0x30b   :  { %1359 = vst [vmem:[#allocation26_spill] sm:$0xff] %v1172_v47 }
 0x33b   :  { %v187_v21 = vpop.xlane.xlu1 %186 }
 0x33c   :  { %889 = vrcp.f32 %v187_v21 }
 0x346   :  { %v890_v60 = vpop.eup %889 }
 0x347   :  { %v193_v37 = vrot.slane %v890_v60, %v975_v22  ;;  %v197_v13 = vrot.slane %v890_v60, %v992_v34 }
 0x349   :  { %v200_v57 = vmul.f32 %v996_v42, %v193_v37  ;;  %v201_v60 = vmul.f32 %v998_v43, %v197_v13 }
 0x34b   :  { %v1143_v10 = vrot.slane %v200_v57, %v975_v22  ;;  %v1146_v11 = vrot.slane %v200_v57, %v992_v34  ;;  %v1153_v59 = vrot.slane %v200_v57, %v1007_v46  ;;  %v1156_v42 = vrot.slane %v200_v57, %v1014_v49 }
 0x34c   :  { %v1159_v37 = vrot.slane %v200_v57, %v1021_v52  ;;  %v1165_v16 = vrot.slane %v200_v57, %v1028_v55  ;;  %v1175_v35 = vrot.slane %v200_v57, %v1042_v61 }
 0x34d   :  { %v259_v21 = vmul.f32 %v1052_v2, %v1143_v10  ;;  %v321_v26 = vmul.f32 %v290_v29, %v1146_v11  ;;  %v257_v28 = vmul.f32 %v1050_v1, %v1143_v10  ;;  %v1168_v2 = vrot.slane %v200_v57, %v1035_v58 }
 0x34e   :  { %v319_v29 = vmul.f32 %v282_v19, %v1146_v11  ;;  %v391_v15 = vmul.f32 %v360_v38, %v1153_v59  ;;  %v318_v43 = vmul.f32 %v1062_v7, %v1146_v11  ;;  %v461_v1 = vmul.f32 %v430_v50, %v1156_v42 }
 0x34f   :  { %v329_v45 = vadd.f32 %v321_v26, %v259_v21  ;;  %v256_v26 = vmul.f32 %v1044_v62, %v1143_v10  ;;  %v531_v13 = vmul.f32 %v500_v63, %v1159_v37  ;;  %v389_v19 = vmul.f32 %v1076_v18, %v1153_v59  ;;  %v702_v18 = vpop.permute.xlu1 %701 }
 0x350   :  { %v327_v21 = vadd.f32 %v319_v29, %v257_v28  ;;  %v459_v47 = vmul.f32 %v1088_v30, %v1156_v42  ;;  %v388_v36 = vmul.f32 %v1090_v31, %v1153_v59  ;;  %v529_v62 = vmul.f32 %v492_v39, %v1159_v37 }
 0x351   :  { %v399_v38 = vadd.f32 %v391_v15, %v329_v45  ;;  %v326_v57 = vadd.f32 %v318_v43, %v256_v26  ;;  %v599_v7 = vmul.f32 %v562_v51, %v1165_v16  ;;  %v1192_v50 = vrot.slane %v201_v60, %v975_v22  ;;  %v698_v26 = vpop.permute.xlu0 %697 }
 0x352   :  { %v397_v25 = vadd.f32 %v389_v19, %v327_v21  ;;  %v669_v63 = vmul.f32 %v632_v0, %v1168_v2  ;;  %v458_v15 = vmul.f32 %v1102_v40, %v1156_v42  ;;  %v1198_v30 = vrot.slane %v201_v60, %v992_v34 }
 0x353   :  { %v396_v28 = vadd.f32 %v388_v36, %v326_v57  ;;  %v739_v31 = vmul.f32 %v702_v18, %v1175_v35  ;;  %v528_v39 = vmul.f32 %v488_v53, %v1159_v37  ;;  %v1203_v51 = vrot.slane %v201_v60, %v1007_v46 }
 0x354   :  { %v467_v45 = vadd.f32 %v459_v47, %v397_v25  ;;  %v469_v22 = vadd.f32 %v461_v1, %v399_v38  ;;  %v598_v0 = vmul.f32 %v558_v8, %v1165_v16  ;;  %v261_v36 = vmul.f32 %v1058_v6, %v1192_v50 }
 0x355   :  { %v466_v29 = vadd.f32 %v458_v15, %v396_v28  ;;  %v668_v34 = vmul.f32 %v628_v24, %v1168_v2  ;;  %v738_v25 = vmul.f32 %v698_v26, %v1175_v35  ;;  %v1211_v47 = vrot.slane %v201_v60, %v1014_v49 }
 0x356   :  { %v537_v40 = vadd.f32 %v529_v62, %v467_v45  ;;  %v1214_v46 = vrot.slane %v201_v60, %v1021_v52  ;;  %v323_v43 = vmul.f32 %v1080_v23, %v1198_v30  ;;  %v260_v8 = vmul.f32 %v1054_v3, %v1192_v50 }
 0x357   :  { %v536_v53 = vadd.f32 %v528_v39, %v466_v29  ;;  %v393_v6 = vmul.f32 %v1078_v20, %v1203_v51  ;;  %v1223_v24 = vrot.slane %v201_v60, %v1028_v55  ;;  %v322_v49 = vmul.f32 %v1065_v12, %v1198_v30  ;;  %v1360_v29 = vld [vmem:[#allocation10_spill] sm:$0xff] }
 0x358   :  { %v607_v1 = vadd.f32 %v599_v7, %v537_v40  ;;  %v1228_v52 = vrot.slane %v201_v60, %v1035_v58  ;;  %v1231_v21 = vrot.slane %v201_v60, %v1042_v61  ;;  %v331_v23 = vadd.f32 %v323_v43, %v261_v36  ;;  %v721_v60 = vpop.permute.xlu1 %720  ;;  %v1361_v40 = vld [vmem:[#allocation13_spill] sm:$0xff] }
 0x359   :  { %v606_v19 = vadd.f32 %v598_v0, %v536_v53  ;;  %v1233_v38 = vadd.f32 %v531_v13, %v469_v22  ;;  %v330_v57 = vadd.f32 %v322_v49, %v260_v8  ;;  %v392_v20 = vmul.f32 %v1094_v33, %v1203_v51  ;;  %v1364_v8 = vld [vmem:[#allocation8_spill] sm:$0xff] }
 0x35a   :  { %v677_v3 = vadd.f32 %v669_v63, %v607_v1  ;;  %v463_v62 = vmul.f32 %v1092_v32, %v1211_v47  ;;  %v533_v12 = vmul.f32 %v1104_v41, %v1214_v46  ;;  %v401_v58 = vadd.f32 %v393_v6, %v331_v23  ;;  %v1365_v6 = vld [vmem:[#allocation9_spill] sm:$0xff]  ;;  %v1366_v23 = vld [vmem:[#allocation15_spill] sm:$0xff] }
 0x35b   :  { %v676_v55 = vadd.f32 %v668_v34, %v606_v19  ;;  %v603_v61 = vmul.f32 %v1114_v54, %v1223_v24  ;;  %v400_v13 = vadd.f32 %v392_v20, %v330_v57  ;;  %v462_v63 = vmul.f32 %v1106_v44, %v1211_v47  ;;  %v1367_v57 = vld [vmem:[#allocation19_spill] sm:$0xff] }
 0x35c   :  { %v747_v7 = vadd.f32 %v739_v31, %v677_v3  ;;  %v673_v33 = vmul.f32 %v1124_v5, %v1228_v52  ;;  %v471_v28 = vadd.f32 %v463_v62, %v401_v58  ;;  %v743_v32 = vmul.f32 %v721_v60, %v1231_v21 }
 0x35d   :  { %v746_v18 = vadd.f32 %v738_v25, %v676_v55  ;;  %v470_v15 = vadd.f32 %v462_v63, %v400_v13  ;;  %v532_v41 = vmul.f32 %v1116_v56, %v1214_v46  ;;  %v262_v45 = vmul.f32 %v1074_v17, %v1192_v50  ;;  %v717_v17 = vpop.permute.xlu0 %716  ;;  %v1363_v25 = vld [vmem:[#allocation16_spill] sm:$0xff]  ;;  %v725_v13 = vpop.permute.xlu1 %724 }
 0x35e   :  { %v324_v54 = vmul.f32 %v1084_v27, %v1198_v30  ;;  %766 = vperm.xlu1 %879, %v747_v7   ;;  %v541_v31 = vadd.f32 %v533_v12, %v471_v28  ;;  %v602_v44 = vmul.f32 %v1126_v9, %v1223_v24  ;;  %v258_v5 = vmul.f32 %v1056_v4, %v1143_v10  ;;  %v1369_v7 = vld [vmem:[#allocation24_spill] sm:$0xff]  ;;  %v1371_v28 = vld [vmem:[#allocation22_spill] sm:$0xff] }
 0x35f   :  { %v320_v39 = vmul.f32 %v1068_v14, %v1146_v11  ;;  %763 = vperm.xlu0 %880, %v746_v18   ;;  %v540_v22 = vadd.f32 %v532_v41, %v470_v15  ;;  %v672_v56 = vmul.f32 %v1136_v48, %v1228_v52  ;;  %v394_v27 = vmul.f32 %v1360_v29, %v1203_v51  ;;  %v1362_v14 = vld [vmem:[#allocation12_spill] sm:$0xff]  ;;  %v1372_v15 = vld [vmem:[#allocation14_spill] sm:$0xff] }
 0x360   :  { %v332_v0 = vadd.f32 %v324_v54, %v262_v45  ;;  %v611_v26 = vadd.f32 %v603_v61, %v541_v31  ;;  %v742_v36 = vmul.f32 %v717_v17, %v1231_v21  ;;  %v390_v4 = vmul.f32 %v1361_v40, %v1153_v59  ;;  %v1373_v45 = vld [vmem:[#allocation21_spill] sm:$0xff]  ;;  %v1376_v17 = vld [vmem:[#allocation26_spill] sm:$0xff] }
 0x361   :  { %v328_v9 = vadd.f32 %v320_v39, %v258_v5  ;;  %v610_v10 = vadd.f32 %v602_v44, %v540_v22  ;;  %v464_v11 = vmul.f32 %v1362_v14, %v1211_v47  ;;  %v460_v48 = vmul.f32 %v1363_v25, %v1156_v42  ;;  %v1368_v42 = vld [vmem:[#allocation11_spill] sm:$0xff]  ;;  %v706_v18 = vpop.permute.xlu0 %705  ;;  %v1374_v5 = vld [vmem:[#allocation25_spill] sm:$0xff] }
 0x362   :  { %v402_v34 = vadd.f32 %v394_v27, %v332_v0  ;;  %v681_v53 = vadd.f32 %v673_v33, %v611_v26  ;;  %v263_v1 = vmul.f32 %v1364_v8, %v1192_v50  ;;  %v325_v49 = vmul.f32 %v1365_v6, %v1198_v30  ;;  %v1370_v30 = vld [vmem:[#allocation18_spill] sm:$0xff] }
 0x363   :  { %v398_v43 = vadd.f32 %v390_v4, %v328_v9  ;;  %v680_v19 = vadd.f32 %v672_v56, %v610_v10  ;;  %v534_v59 = vmul.f32 %v1366_v23, %v1214_v46  ;;  %v530_v20 = vmul.f32 %v1367_v57, %v1159_v37  ;;  %v1375_v56 = vld [vmem:[#allocation17_spill] sm:$0xff]  ;;  %v729_v4 = vpop.permute.xlu1 %728  ;;  %v1379_v6 = vld [vmem:[#allocation6_spill] sm:$0xff] }
 0x364   :  { %v472_v3 = vadd.f32 %v464_v11, %v402_v34  ;;  %v751_v55 = vadd.f32 %v743_v32, %v681_v53  ;;  %v333_v12 = vadd.f32 %v325_v49, %v263_v1  ;;  %v395_v58 = vmul.f32 %v1368_v42, %v1203_v51 }
 0x365   :  { %v468_v62 = vadd.f32 %v460_v48, %v398_v43  ;;  %v601_v50 = vmul.f32 %v1369_v7, %v1165_v16  ;;  %v750_v61 = vadd.f32 %v742_v36, %v680_v19  ;;  %v604_v60 = vmul.f32 %v1370_v30, %v1223_v24  ;;  %v1377_v36 = vld [vmem:[#allocation20_spill] sm:$0xff]  ;;  %v710_v10 = vpop.permute.xlu0 %709 }
 0x366   :  { %v542_v63 = vadd.f32 %v534_v59, %v472_v3  ;;  %v600_v37 = vmul.f32 %v1371_v28, %v1165_v16  ;;  %v403_v32 = vadd.f32 %v395_v58, %v333_v12  ;;  %v465_v41 = vmul.f32 %v1372_v15, %v1211_v47  ;;  %778 = vperm.xlu1 %879, %v751_v55   ;;  %v1380_v3 = vld [vmem:[#allocation5_spill] sm:$0xff]  ;;  %v1381_v12 = vld [vmem:[#allocation7_spill] sm:$0xff] }
 0x367   :  { %v538_v33 = vadd.f32 %v530_v20, %v468_v62  ;;  %v609_v51 = vadd.f32 %v601_v50, %v1233_v38  ;;  %v674_v54 = vmul.f32 %v1373_v45, %v1228_v52  ;;  %775 = vperm.xlu0 %880, %v750_v61   ;;  %v670_v39 = vmul.f32 %v1374_v5, %v1168_v2 }
 0x368   :  { %v612_v31 = vadd.f32 %v604_v60, %v542_v63  ;;  %v473_v22 = vadd.f32 %v465_v41, %v403_v32  ;;  %v535_v16 = vmul.f32 %v1375_v56, %v1214_v46  ;;  %v671_v29 = vmul.f32 %v1376_v17, %v1168_v2  ;;  %v1378_v46 = vld [vmem:[#allocation23_spill] sm:$0xff] }
 0x369   :  { %v608_v44 = vadd.f32 %v600_v37, %v538_v33  ;;  %v744_v27 = vmul.f32 %v725_v13, %v1231_v21  ;;  %v740_v0 = vmul.f32 %v706_v18, %v1175_v35  ;;  %v605_v9 = vmul.f32 %v1377_v36, %v1223_v24 }
 0x36a   :  { %v682_v47 = vadd.f32 %v674_v54, %v612_v31  ;;  %v543_v26 = vadd.f32 %v535_v16, %v473_v22  ;;  %v679_v14 = vadd.f32 %v671_v29, %v609_v51  ;;  %v675_v25 = vmul.f32 %v1378_v46, %v1228_v52 }
 0x36b   :  { %v678_v38 = vadd.f32 %v670_v39, %v608_v44  ;;  %v745_v48 = vmul.f32 %v729_v4, %v1231_v21  ;;  %v741_v53 = vmul.f32 %v710_v10, %v1175_v35  ;;  %v790_v49 = vadd.s32 4294967288, %v1379_v6 }
 0x36c   :  { %v752_v40 = vadd.f32 %v744_v27, %v682_v47  ;;  %v613_v34 = vadd.f32 %v605_v9, %v543_v26  ;;  %v797_v59 = vadd.s32 4294967280, %v1379_v6  ;;  %v804_v52 = vadd.s32 4294967272, %v1379_v6 }
 0x36d   :  { %v748_v11 = vadd.f32 %v740_v0, %v678_v38  ;;  %v749_v8 = vadd.f32 %v741_v53, %v679_v14  ;;  %v793_v57 = vsub.s32 %v790_v49, %v1380_v3 }
 0x36e   :  { %781 = vperm.xlu1 %879, %v752_v40   ;;  %v683_v2 = vadd.f32 %v675_v25, %v613_v34  ;;  %v800_v21 = vsub.s32 %v797_v59, %v1380_v3  ;;  %v807_v55 = vsub.s32 %v804_v52, %v1380_v3 }
 0x36f   :  { %769 = vperm.xlu0 %880, %v748_v11  }
 0x370   :  { %v753_v43 = vadd.f32 %v745_v48, %v683_v2 }
 0x372   :  { %784 = vperm.xlu1 %879, %v753_v43  }
 0x373   :  { %772 = vperm.xlu0 %880, %v749_v8  }
 0x3dd   :  { %v767_v24 = vpop.permute.xlu1 %766 }
 0x3de   :  { %v764_v1 = vpop.permute.xlu0 %763  ;;  %v794_v62 = vrot.slane %v767_v24, %v793_v57 }
 0x3df   :  { %v789_v42 = vrot.slane %v764_v1, %v1381_v12 }
 0x3e1   :  { %v796_v13 = vsel %vm795_vm4, %v794_v62, %v789_v42 }
 0x3e5   :  { %v779_v19 = vpop.permute.xlu1 %778 }
 0x3e6   :  { %v776_v23 = vpop.permute.xlu0 %775  ;;  %v818_v58 = vrot.slane %v779_v19, %v793_v57 }
 0x3e7   :  { %v814_v7 = vrot.slane %v776_v23, %v1381_v12 }
 0x3e9   :  { %v819_v63 = vsel %vm795_vm4, %v818_v58, %v814_v7 }
 0x3ed   :  { %v782_v35 = vpop.permute.xlu1 %781 }
 0x3ee   :  { %v770_v20 = vpop.permute.xlu0 %769  ;;  %v823_v50 = vrot.slane %v782_v35, %v800_v21 }
 0x3ef   :  { %v801_v61 = vrot.slane %v770_v20, %v800_v21 }
 0x3f0   :  { %v824_v28 = vsel %vm802_vm5, %v823_v50, %v819_v63 }
 0x3f1   :  { %v785_v30 = vpop.permute.xlu1 %784  ;;  %v803_v37 = vsel %vm802_vm5, %v801_v61, %v796_v13 }
 0x3f2   :  { %v773_v60 = vpop.permute.xlu0 %772  ;;  %v828_v18 = vrot.slane %v785_v30, %v807_v55 }
 0x3f3   :  { %v808_v33 = vrot.slane %v773_v60, %v807_v55 }
 0x3f4   :  { %v829_v15 = vsel %vm809_vm6, %v828_v18, %v824_v28 }
 0x3f5   :  { %v810_v32 = vsel %vm809_vm6, %v808_v33, %v803_v37 }
 0x3f6   :  { %v830_v41 = vsel %vm143_vm2, %v829_v15, %v810_v32 }
 0x3f7   :  { %833 = vst.msk [vmem:[#allocation2] sm:$0x3] %vm832_vm7, %v830_v41 }
 0x3f8   :  { %902 = shalt.err (!%p899_p4)
}
 0x3f9   :  { %s903_s6 = scalar_lea.hbm %s1331_s4, 32 }
 0x3fa   :  { %p904_p5 = scmp.ne.s32.totalorder %s1331_s4, %s903_s6  ;;  %p907_p6 = scmp.lt.u32.totalorder %s903_s6, %s1331_s4 }
 0x3fc   :  { %p909_p7 = pnand %p907_p6, %p904_p5 }
 0x3fe   :  { %912 = shalt.err (!%p909_p7)
}
 0x3ff   :  { %843 = dma.vmem_to_hbm [thread:$0]  %s841_s2, 32, %s1331_s4, [#allocation3]  }
 0x400   :  { %913 = dma.done.wait [#allocation3], 32  }
 0x401   :  { %914 = vsyncadd [#allocation3], 4294967264 }
 0x402   :  { %847 = vsyncpa [#allocation3], 1 }

</bundles_post_ra>
